<compile_context>
chip_gen: v6e
topology: v6e:2x2x1
jax: 0.10.0
libtpu: 0.0.40
codegen_flags: <defaults>
</compile_context>

<pallas_src>
from functools import partial

import jax
import jax.numpy as jnp
from jax import lax
from jax.experimental import pallas as pl
from jax.experimental.pallas import tpu as pltpu


# ----------------------------- fused Pallas kernel -------------------------

def _fused_attention_kernel(x_ref, ctx_ref, wq_ref, bq_ref, wkv_ref, bkv_ref,
                            wo_ref, bo_ref, o_ref, *, num_heads, dim_head, scale):
    """One batch element per grid step: projections + SDPA + output proj."""
    x = x_ref[0]                      # (N1, C)
    ctx = ctx_ref[0]                  # (N2, Cc)
    inner = num_heads * dim_head
    n1 = x_ref.shape[1]
    c_pad = o_ref.shape[2]

    # --- q / kv projections on the MXU (f32 accumulation) -----------------
    q = jnp.dot(x, wq_ref[...], preferred_element_type=jnp.float32) + bq_ref[...]
    q = q * scale                     # fold 1/sqrt(dh) once on the small (N1, inner) tile
    kv = jnp.dot(ctx, wkv_ref[...], preferred_element_type=jnp.float32) + bkv_ref[...]

    # --- per-head SDPA; head-merge fused into the output projection -------
    # acc starts from the (broadcast) output bias; each head adds its
    # o_h @ Wo[h*dh:(h+1)*dh, :] contribution -> lane-dense (N1, C_pad).
    acc = jnp.zeros((n1, c_pad), jnp.float32) + bo_ref[...]
    for h in range(num_heads):        # static unroll (num_heads is small)
        lo = h * dim_head
        qh = q[:, lo:lo + dim_head]                       # (N1, dh)
        kh = kv[:, lo:lo + dim_head]                      # (N2, dh)
        vh = kv[:, inner + lo:inner + lo + dim_head]      # (N2, dh)

        # Q.K^T contracting the dh axis directly (no transpose of K).
        sim = lax.dot_general(qh, kh,
                              dimension_numbers=(((1,), (1,)), ((), ())),
                              preferred_element_type=jnp.float32)  # (N1, N2)

        m = jnp.max(sim, axis=-1, keepdims=True)
        p = jnp.exp(sim - m)
        denom = jnp.sum(p, axis=-1, keepdims=True)        # (N1, 1)

        o_h = jnp.dot(p, vh, preferred_element_type=jnp.float32)   # (N1, dh)
        # Scale the small (N1, dh) output once; EUP reciprocal is ~free.
        o_h = o_h * pl.reciprocal(denom, approx=True)

        # Fused head-merge + output projection: static slice of the weight ref.
        acc = acc + jnp.dot(o_h, wo_ref[pl.ds(lo, dim_head), :],
                            preferred_element_type=jnp.float32)

    o_ref[0] = acc.astype(o_ref.dtype)


# ----------------------------- wrapper --------------------------------------

def attention_forward(x, params, *, num_heads, dim_head, context=None):
    """Forward pass equivalent to Attention.forward(x, context)."""
    B, N1, C = x.shape
    inner = num_heads * dim_head
    ctx = x if context is None else context
    N2, Cc = ctx.shape[1], ctx.shape[2]
    scale = dim_head ** (-0.5)

    # Lane-dense output: pad the output projection to a multiple of 128 lanes
    # so the kernel's final store is an unmasked full vst; slice back after.
    C_pad = max(128, ((C + 127) // 128) * 128)
    wo_p = jnp.zeros((inner, C_pad), params["wo"].dtype).at[:, :C].set(params["wo"])
    bo_p = jnp.zeros((1, C_pad), params["bo"].dtype).at[0, :C].set(params["bo"])
    bq2 = params["bq"].reshape(1, inner)
    bkv2 = params["bkv"].reshape(1, 2 * inner)

    kern = partial(_fused_attention_kernel,
                   num_heads=num_heads, dim_head=dim_head, scale=scale)

    flops = 2 * B * (N1 * C * inner                # to_q
                     + N2 * Cc * 2 * inner         # to_kv
                     + 2 * num_heads * N1 * N2 * dim_head   # QK^T + PV
                     + N1 * inner * C_pad)         # to_out
    transcendentals = B * num_heads * N1 * N2      # exp
    bytes_accessed = 4 * (x.size + ctx.size
                          + params["wq"].size + params["wkv"].size
                          + wo_p.size + bq2.size + bkv2.size + bo_p.size
                          + B * N1 * C_pad)

    out_p = pl.pallas_call(
        kern,
        out_shape=jax.ShapeDtypeStruct((B, N1, C_pad), x.dtype),
        grid=(B,),
        in_specs=[
            pl.BlockSpec((1, N1, C),       lambda b: (b, 0, 0)),   # x
            pl.BlockSpec((1, N2, Cc),      lambda b: (b, 0, 0)),   # context
            pl.BlockSpec((C, inner),       lambda b: (0, 0)),      # wq (resident)
            pl.BlockSpec((1, inner),       lambda b: (0, 0)),      # bq
            pl.BlockSpec((Cc, 2 * inner),  lambda b: (0, 0)),      # wkv
            pl.BlockSpec((1, 2 * inner),   lambda b: (0, 0)),      # bkv
            pl.BlockSpec((inner, C_pad),   lambda b: (0, 0)),      # wo (padded)
            pl.BlockSpec((1, C_pad),       lambda b: (0, 0)),      # bo (padded)
        ],
        out_specs=pl.BlockSpec((1, N1, C_pad), lambda b: (b, 0, 0)),
        compiler_params=pltpu.CompilerParams(
            dimension_semantics=("parallel",)),
        cost_estimate=pl.CostEstimate(flops=int(flops),
                                      transcendentals=int(transcendentals),
                                      bytes_accessed=int(bytes_accessed)),
    )(x, ctx, params["wq"], bq2, params["wkv"], bkv2, wo_p, bo_p)

    return out_p[:, :, :C]


# ----------------------------- reference (plain JAX) ------------------------

def reference_forward(x, params, *, num_heads, dim_head, context=None):
    B, N1, C = x.shape
    inner = num_heads * dim_head
    ctx = x if context is None else context
    N2 = ctx.shape[1]
    scale = dim_head ** (-0.5)
    q = x @ params["wq"] + params["bq"]
    kv = ctx @ params["wkv"] + params["bkv"]
    k, v = kv[..., :inner], kv[..., inner:]
    q = q.reshape(B, N1, num_heads, dim_head).transpose(0, 2, 1, 3)
    k = k.reshape(B, N2, num_heads, dim_head).transpose(0, 2, 1, 3)
    v = v.reshape(B, N2, num_heads, dim_head).transpose(0, 2, 1, 3)
    sim = jnp.einsum("bhqd,bhkd->bhqk", q, k) * scale
    attn = jax.nn.softmax(sim, axis=-1)
    o = jnp.einsum("bhqk,bhkd->bhqd", attn, v)
    o = o.transpose(0, 2, 1, 3).reshape(B, N1, inner)
    return o @ params["wo"] + params["bo"]


# ----------------------------- main ------------------------------------------

if __name__ == "__main__":
    # Small shapes consistent with the module's forward.
    B, N1 = 2, 8
    query_dim = 32
    num_heads, dim_head = 4, 8
    inner_dim = num_heads * dim_head   # 32
    # qkv_bias=False (module default) -> zero q/kv biases.

    key = jax.random.PRNGKey(0)
    k_x, k_q, k_kv, k_o, k_ob = jax.random.split(key, 5)

    x = jax.random.normal(k_x, (B, N1, query_dim), dtype=jnp.float32)

    params = {
        # stored as (in_features, out_features)
        "wq":  0.05 * jax.random.normal(k_q,  (query_dim, inner_dim),     dtype=jnp.float32),
        "bq":  jnp.zeros((inner_dim,), jnp.float32),       # qkv_bias=False
        "wkv": 0.05 * jax.random.normal(k_kv, (query_dim, 2 * inner_dim), dtype=jnp.float32),
        "bkv": jnp.zeros((2 * inner_dim,), jnp.float32),   # qkv_bias=False
        "wo":  0.05 * jax.random.normal(k_o,  (inner_dim, query_dim),     dtype=jnp.float32),
        "bo":  0.01 * jax.random.normal(k_ob, (query_dim,), dtype=jnp.float32),
    }

    out = attention_forward(x, params, num_heads=num_heads, dim_head=dim_head)
    out = jax.block_until_ready(out)

    ref = reference_forward(x, params, num_heads=num_heads, dim_head=dim_head)
    assert out.shape == (B, N1, query_dim)
    # Tolerance is loosened slightly (1e-3) because the softmax denominator uses
    # the EUP approximate reciprocal; everything else is f32-exact.
    assert jnp.allclose(out, ref, atol=1e-3, rtol=1e-3), "mismatch vs reference"

    print("KERNEL_OK")
</pallas_src>

<mosaic_0001>
module attributes {stable_mosaic.version = 11 : i64} {
  func.func @_fused_attention_kernel(%arg0: i32, %arg1: memref<1x8x32xf32, #tpu.memory_space<vmem>>, %arg2: memref<1x8x32xf32, #tpu.memory_space<vmem>>, %arg3: memref<32x32xf32, #tpu.memory_space<vmem>>, %arg4: memref<1x32xf32, #tpu.memory_space<vmem>>, %arg5: memref<32x64xf32, #tpu.memory_space<vmem>>, %arg6: memref<1x64xf32, #tpu.memory_space<vmem>>, %arg7: memref<32x128xf32, #tpu.memory_space<vmem>>, %arg8: memref<1x128xf32, #tpu.memory_space<vmem>>, %arg9: memref<1x8x128xf32, #tpu.memory_space<vmem>>) attributes {dimension_semantics = [#tpu.dimension_semantics<parallel>], iteration_bounds = array<i64: 2>, scalar_prefetch = 0 : i64, scratch_operands = 0 : i64, tpu.core_type = #tpu.core_type<tc>, window_params = [{transform_indices = @transform_0, window_bounds = array<i64: 1, 8, 32>}, {transform_indices = @transform_1, window_bounds = array<i64: 1, 8, 32>}, {pipeline_mode = #tpu.pipeline_mode<synchronous>, transform_indices = @transform_2, window_bounds = array<i64: 32, 32>}, {pipeline_mode = #tpu.pipeline_mode<synchronous>, transform_indices = @transform_3, window_bounds = array<i64: 1, 32>}, {pipeline_mode = #tpu.pipeline_mode<synchronous>, transform_indices = @transform_4, window_bounds = array<i64: 32, 64>}, {pipeline_mode = #tpu.pipeline_mode<synchronous>, transform_indices = @transform_5, window_bounds = array<i64: 1, 64>}, {pipeline_mode = #tpu.pipeline_mode<synchronous>, transform_indices = @transform_6, window_bounds = array<i64: 32, 128>}, {pipeline_mode = #tpu.pipeline_mode<synchronous>, transform_indices = @transform_7, window_bounds = array<i64: 1, 128>}, {transform_indices = @transform_8, window_bounds = array<i64: 1, 8, 128>}]} {
    %c0 = arith.constant 0 : index
    %c0_0 = arith.constant 0 : index
    %c0_1 = arith.constant 0 : index
    %0 = vector.load %arg1[%c0, %c0_0, %c0_1] : memref<1x8x32xf32, #tpu.memory_space<vmem>>, vector<1x8x32xf32>
    %1 = vector.shape_cast %0 : vector<1x8x32xf32> to vector<8x32xf32>
    %c0_2 = arith.constant 0 : index
    %c0_3 = arith.constant 0 : index
    %c0_4 = arith.constant 0 : index
    %2 = vector.load %arg2[%c0_2, %c0_3, %c0_4] : memref<1x8x32xf32, #tpu.memory_space<vmem>>, vector<1x8x32xf32>
    %3 = vector.shape_cast %2 : vector<1x8x32xf32> to vector<8x32xf32>
    %c0_5 = arith.constant 0 : index
    %c0_6 = arith.constant 0 : index
    %4 = vector.load %arg3[%c0_5, %c0_6] : memref<32x32xf32, #tpu.memory_space<vmem>>, vector<32x32xf32>
    %cst = arith.constant dense<0.000000e+00> : vector<8x32xf32>
    %5 = tpu.matmul %1, %4, %cst {dimension_numbers = #tpu.dot_dimension_numbers<[1], [0], [0], [1], [0, 0, 1, 1], [], []>} : vector<8x32xf32>, vector<32x32xf32>, vector<8x32xf32> -> vector<8x32xf32>
    %c0_7 = arith.constant 0 : index
    %c0_8 = arith.constant 0 : index
    %6 = vector.load %arg4[%c0_7, %c0_8] : memref<1x32xf32, #tpu.memory_space<vmem>>, vector<1x32xf32>
    %7 = vector.broadcast %6 : vector<1x32xf32> to vector<8x32xf32>
    %8 = arith.addf %5, %7 : vector<8x32xf32>
    %cst_9 = arith.constant 0.353553385 : f32
    %9 = vector.broadcast %cst_9 : f32 to vector<8x32xf32>
    %10 = arith.mulf %8, %9 : vector<8x32xf32>
    %c0_10 = arith.constant 0 : index
    %c0_11 = arith.constant 0 : index
    %11 = vector.load %arg5[%c0_10, %c0_11] : memref<32x64xf32, #tpu.memory_space<vmem>>, vector<32x64xf32>
    %cst_12 = arith.constant dense<0.000000e+00> : vector<8x64xf32>
    %12 = tpu.matmul %3, %11, %cst_12 {dimension_numbers = #tpu.dot_dimension_numbers<[1], [0], [0], [1], [0, 0, 1, 1], [], []>} : vector<8x32xf32>, vector<32x64xf32>, vector<8x64xf32> -> vector<8x64xf32>
    %c0_13 = arith.constant 0 : index
    %c0_14 = arith.constant 0 : index
    %13 = vector.load %arg6[%c0_13, %c0_14] : memref<1x64xf32, #tpu.memory_space<vmem>>, vector<1x64xf32>
    %14 = vector.broadcast %13 : vector<1x64xf32> to vector<8x64xf32>
    %15 = arith.addf %12, %14 : vector<8x64xf32>
    %cst_15 = arith.constant 0.000000e+00 : f32
    %16 = vector.broadcast %cst_15 : f32 to vector<8x128xf32>
    %c0_16 = arith.constant 0 : index
    %c0_17 = arith.constant 0 : index
    %17 = vector.load %arg8[%c0_16, %c0_17] : memref<1x128xf32, #tpu.memory_space<vmem>>, vector<1x128xf32>
    %18 = vector.broadcast %17 : vector<1x128xf32> to vector<8x128xf32>
    %19 = arith.addf %16, %18 : vector<8x128xf32>
    %20 = vector.extract_strided_slice %10 {offsets = [0, 0], sizes = [8, 8], strides = [1, 1]} : vector<8x32xf32> to vector<8x8xf32>
    %21 = vector.extract_strided_slice %15 {offsets = [0, 0], sizes = [8, 8], strides = [1, 1]} : vector<8x64xf32> to vector<8x8xf32>
    %22 = vector.extract_strided_slice %15 {offsets = [0, 32], sizes = [8, 8], strides = [1, 1]} : vector<8x64xf32> to vector<8x8xf32>
    %cst_18 = arith.constant dense<0.000000e+00> : vector<8x8xf32>
    %23 = tpu.matmul %20, %21, %cst_18 {dimension_numbers = #tpu.dot_dimension_numbers<[1], [1], [0], [0], [0, 0, 1, 0], [], []>} : vector<8x8xf32>, vector<8x8xf32>, vector<8x8xf32> -> vector<8x8xf32>
    %cst_19 = arith.constant dense<0xFF800000> : vector<8xf32>
    %24 = vector.multi_reduction <maximumf>, %23, %cst_19 [1] : vector<8x8xf32> to vector<8xf32>
    %25 = vector.shape_cast %24 : vector<8xf32> to vector<8x1xf32>
    %26 = vector.broadcast %25 : vector<8x1xf32> to vector<8x8xf32>
    %27 = arith.subf %23, %26 : vector<8x8xf32>
    %28 = math.exp %27 : vector<8x8xf32>
    %cst_20 = arith.constant dense<0.000000e+00> : vector<8xf32>
    %29 = vector.multi_reduction <add>, %28, %cst_20 [1] : vector<8x8xf32> to vector<8xf32>
    %30 = vector.shape_cast %29 : vector<8xf32> to vector<8x1xf32>
    %cst_21 = arith.constant dense<0.000000e+00> : vector<8x8xf32>
    %31 = tpu.matmul %28, %22, %cst_21 {dimension_numbers = #tpu.dot_dimension_numbers<[1], [0], [0], [1], [0, 0, 1, 1], [], []>} : vector<8x8xf32>, vector<8x8xf32>, vector<8x8xf32> -> vector<8x8xf32>
    %32 = tpu.reciprocal %30 {approx = true} : vector<8x1xf32> -> vector<8x1xf32>
    %33 = vector.broadcast %32 : vector<8x1xf32> to vector<8x8xf32>
    %34 = arith.mulf %31, %33 : vector<8x8xf32>
    %c0_22 = arith.constant 0 : index
    %c0_23 = arith.constant 0 : index
    %35 = vector.load %arg7[%c0_22, %c0_23] : memref<32x128xf32, #tpu.memory_space<vmem>>, vector<8x128xf32>
    %cst_24 = arith.constant dense<0.000000e+00> : vector<8x128xf32>
    %36 = tpu.matmul %34, %35, %cst_24 {dimension_numbers = #tpu.dot_dimension_numbers<[1], [0], [0], [1], [0, 0, 1, 1], [], []>} : vector<8x8xf32>, vector<8x128xf32>, vector<8x128xf32> -> vector<8x128xf32>
    %37 = arith.addf %19, %36 : vector<8x128xf32>
    %38 = vector.extract_strided_slice %10 {offsets = [0, 8], sizes = [8, 8], strides = [1, 1]} : vector<8x32xf32> to vector<8x8xf32>
    %39 = vector.extract_strided_slice %15 {offsets = [0, 8], sizes = [8, 8], strides = [1, 1]} : vector<8x64xf32> to vector<8x8xf32>
    %40 = vector.extract_strided_slice %15 {offsets = [0, 40], sizes = [8, 8], strides = [1, 1]} : vector<8x64xf32> to vector<8x8xf32>
    %cst_25 = arith.constant dense<0.000000e+00> : vector<8x8xf32>
    %41 = tpu.matmul %38, %39, %cst_25 {dimension_numbers = #tpu.dot_dimension_numbers<[1], [1], [0], [0], [0, 0, 1, 0], [], []>} : vector<8x8xf32>, vector<8x8xf32>, vector<8x8xf32> -> vector<8x8xf32>
    %cst_26 = arith.constant dense<0xFF800000> : vector<8xf32>
    %42 = vector.multi_reduction <maximumf>, %41, %cst_26 [1] : vector<8x8xf32> to vector<8xf32>
    %43 = vector.shape_cast %42 : vector<8xf32> to vector<8x1xf32>
    %44 = vector.broadcast %43 : vector<8x1xf32> to vector<8x8xf32>
    %45 = arith.subf %41, %44 : vector<8x8xf32>
    %46 = math.exp %45 : vector<8x8xf32>
    %cst_27 = arith.constant dense<0.000000e+00> : vector<8xf32>
    %47 = vector.multi_reduction <add>, %46, %cst_27 [1] : vector<8x8xf32> to vector<8xf32>
    %48 = vector.shape_cast %47 : vector<8xf32> to vector<8x1xf32>
    %cst_28 = arith.constant dense<0.000000e+00> : vector<8x8xf32>
    %49 = tpu.matmul %46, %40, %cst_28 {dimension_numbers = #tpu.dot_dimension_numbers<[1], [0], [0], [1], [0, 0, 1, 1], [], []>} : vector<8x8xf32>, vector<8x8xf32>, vector<8x8xf32> -> vector<8x8xf32>
    %50 = tpu.reciprocal %48 {approx = true} : vector<8x1xf32> -> vector<8x1xf32>
    %51 = vector.broadcast %50 : vector<8x1xf32> to vector<8x8xf32>
    %52 = arith.mulf %49, %51 : vector<8x8xf32>
    %c8 = arith.constant 8 : index
    %c0_29 = arith.constant 0 : index
    %53 = vector.load %arg7[%c8, %c0_29] : memref<32x128xf32, #tpu.memory_space<vmem>>, vector<8x128xf32>
    %cst_30 = arith.constant dense<0.000000e+00> : vector<8x128xf32>
    %54 = tpu.matmul %52, %53, %cst_30 {dimension_numbers = #tpu.dot_dimension_numbers<[1], [0], [0], [1], [0, 0, 1, 1], [], []>} : vector<8x8xf32>, vector<8x128xf32>, vector<8x128xf32> -> vector<8x128xf32>
    %55 = arith.addf %37, %54 : vector<8x128xf32>
    %56 = vector.extract_strided_slice %10 {offsets = [0, 16], sizes = [8, 8], strides = [1, 1]} : vector<8x32xf32> to vector<8x8xf32>
    %57 = vector.extract_strided_slice %15 {offsets = [0, 16], sizes = [8, 8], strides = [1, 1]} : vector<8x64xf32> to vector<8x8xf32>
    %58 = vector.extract_strided_slice %15 {offsets = [0, 48], sizes = [8, 8], strides = [1, 1]} : vector<8x64xf32> to vector<8x8xf32>
    %cst_31 = arith.constant dense<0.000000e+00> : vector<8x8xf32>
    %59 = tpu.matmul %56, %57, %cst_31 {dimension_numbers = #tpu.dot_dimension_numbers<[1], [1], [0], [0], [0, 0, 1, 0], [], []>} : vector<8x8xf32>, vector<8x8xf32>, vector<8x8xf32> -> vector<8x8xf32>
    %cst_32 = arith.constant dense<0xFF800000> : vector<8xf32>
    %60 = vector.multi_reduction <maximumf>, %59, %cst_32 [1] : vector<8x8xf32> to vector<8xf32>
    %61 = vector.shape_cast %60 : vector<8xf32> to vector<8x1xf32>
    %62 = vector.broadcast %61 : vector<8x1xf32> to vector<8x8xf32>
    %63 = arith.subf %59, %62 : vector<8x8xf32>
    %64 = math.exp %63 : vector<8x8xf32>
    %cst_33 = arith.constant dense<0.000000e+00> : vector<8xf32>
    %65 = vector.multi_reduction <add>, %64, %cst_33 [1] : vector<8x8xf32> to vector<8xf32>
    %66 = vector.shape_cast %65 : vector<8xf32> to vector<8x1xf32>
    %cst_34 = arith.constant dense<0.000000e+00> : vector<8x8xf32>
    %67 = tpu.matmul %64, %58, %cst_34 {dimension_numbers = #tpu.dot_dimension_numbers<[1], [0], [0], [1], [0, 0, 1, 1], [], []>} : vector<8x8xf32>, vector<8x8xf32>, vector<8x8xf32> -> vector<8x8xf32>
    %68 = tpu.reciprocal %66 {approx = true} : vector<8x1xf32> -> vector<8x1xf32>
    %69 = vector.broadcast %68 : vector<8x1xf32> to vector<8x8xf32>
    %70 = arith.mulf %67, %69 : vector<8x8xf32>
    %c16 = arith.constant 16 : index
    %c0_35 = arith.constant 0 : index
    %71 = vector.load %arg7[%c16, %c0_35] : memref<32x128xf32, #tpu.memory_space<vmem>>, vector<8x128xf32>
    %cst_36 = arith.constant dense<0.000000e+00> : vector<8x128xf32>
    %72 = tpu.matmul %70, %71, %cst_36 {dimension_numbers = #tpu.dot_dimension_numbers<[1], [0], [0], [1], [0, 0, 1, 1], [], []>} : vector<8x8xf32>, vector<8x128xf32>, vector<8x128xf32> -> vector<8x128xf32>
    %73 = arith.addf %55, %72 : vector<8x128xf32>
    %74 = vector.extract_strided_slice %10 {offsets = [0, 24], sizes = [8, 8], strides = [1, 1]} : vector<8x32xf32> to vector<8x8xf32>
    %75 = vector.extract_strided_slice %15 {offsets = [0, 24], sizes = [8, 8], strides = [1, 1]} : vector<8x64xf32> to vector<8x8xf32>
    %76 = vector.extract_strided_slice %15 {offsets = [0, 56], sizes = [8, 8], strides = [1, 1]} : vector<8x64xf32> to vector<8x8xf32>
    %cst_37 = arith.constant dense<0.000000e+00> : vector<8x8xf32>
    %77 = tpu.matmul %74, %75, %cst_37 {dimension_numbers = #tpu.dot_dimension_numbers<[1], [1], [0], [0], [0, 0, 1, 0], [], []>} : vector<8x8xf32>, vector<8x8xf32>, vector<8x8xf32> -> vector<8x8xf32>
    %cst_38 = arith.constant dense<0xFF800000> : vector<8xf32>
    %78 = vector.multi_reduction <maximumf>, %77, %cst_38 [1] : vector<8x8xf32> to vector<8xf32>
    %79 = vector.shape_cast %78 : vector<8xf32> to vector<8x1xf32>
    %80 = vector.broadcast %79 : vector<8x1xf32> to vector<8x8xf32>
    %81 = arith.subf %77, %80 : vector<8x8xf32>
    %82 = math.exp %81 : vector<8x8xf32>
    %cst_39 = arith.constant dense<0.000000e+00> : vector<8xf32>
    %83 = vector.multi_reduction <add>, %82, %cst_39 [1] : vector<8x8xf32> to vector<8xf32>
    %84 = vector.shape_cast %83 : vector<8xf32> to vector<8x1xf32>
    %cst_40 = arith.constant dense<0.000000e+00> : vector<8x8xf32>
    %85 = tpu.matmul %82, %76, %cst_40 {dimension_numbers = #tpu.dot_dimension_numbers<[1], [0], [0], [1], [0, 0, 1, 1], [], []>} : vector<8x8xf32>, vector<8x8xf32>, vector<8x8xf32> -> vector<8x8xf32>
    %86 = tpu.reciprocal %84 {approx = true} : vector<8x1xf32> -> vector<8x1xf32>
    %87 = vector.broadcast %86 : vector<8x1xf32> to vector<8x8xf32>
    %88 = arith.mulf %85, %87 : vector<8x8xf32>
    %c24 = arith.constant 24 : index
    %c0_41 = arith.constant 0 : index
    %89 = vector.load %arg7[%c24, %c0_41] : memref<32x128xf32, #tpu.memory_space<vmem>>, vector<8x128xf32>
    %cst_42 = arith.constant dense<0.000000e+00> : vector<8x128xf32>
    %90 = tpu.matmul %88, %89, %cst_42 {dimension_numbers = #tpu.dot_dimension_numbers<[1], [0], [0], [1], [0, 0, 1, 1], [], []>} : vector<8x8xf32>, vector<8x128xf32>, vector<8x128xf32> -> vector<8x128xf32>
    %91 = arith.addf %73, %90 : vector<8x128xf32>
    %c0_43 = arith.constant 0 : index
    %c0_44 = arith.constant 0 : index
    %c0_45 = arith.constant 0 : index
    %92 = vector.load %arg9[%c0_43, %c0_44, %c0_45] : memref<1x8x128xf32, #tpu.memory_space<vmem>>, vector<1x8x128xf32>
    %93 = vector.shape_cast %92 : vector<1x8x128xf32> to vector<8x128xf32>
    %94 = vector.shape_cast %91 : vector<8x128xf32> to vector<1x8x128xf32>
    tpu.vector_store %arg9[%c0_43, %c0_44, %c0_45], %94 {strides = array<i32>} : memref<1x8x128xf32, #tpu.memory_space<vmem>>, vector<1x8x128xf32>,
    return
  }
  func.func @transform_0(%arg0: i32) -> (i32, i32, i32) {
    %c0_i32 = arith.constant 0 : i32
    %c0_i32_0 = arith.constant 0 : i32
    %c0_i32_1 = arith.constant 0 : i32
    return %arg0, %c0_i32, %c0_i32_0 : i32, i32, i32
  }
  func.func @transform_1(%arg0: i32) -> (i32, i32, i32) {
    %c0_i32 = arith.constant 0 : i32
    %c0_i32_0 = arith.constant 0 : i32
    %c0_i32_1 = arith.constant 0 : i32
    return %arg0, %c0_i32, %c0_i32_0 : i32, i32, i32
  }
  func.func @transform_2(%arg0: i32) -> (i32, i32) {
    %c0_i32 = arith.constant 0 : i32
    %c0_i32_0 = arith.constant 0 : i32
    %c0_i32_1 = arith.constant 0 : i32
    return %c0_i32, %c0_i32_0 : i32, i32
  }
  func.func @transform_3(%arg0: i32) -> (i32, i32) {
    %c0_i32 = arith.constant 0 : i32
    %c0_i32_0 = arith.constant 0 : i32
    %c0_i32_1 = arith.constant 0 : i32
    return %c0_i32, %c0_i32_0 : i32, i32
  }
  func.func @transform_4(%arg0: i32) -> (i32, i32) {
    %c0_i32 = arith.constant 0 : i32
    %c0_i32_0 = arith.constant 0 : i32
    %c0_i32_1 = arith.constant 0 : i32
    return %c0_i32, %c0_i32_0 : i32, i32
  }
  func.func @transform_5(%arg0: i32) -> (i32, i32) {
    %c0_i32 = arith.constant 0 : i32
    %c0_i32_0 = arith.constant 0 : i32
    %c0_i32_1 = arith.constant 0 : i32
    return %c0_i32, %c0_i32_0 : i32, i32
  }
  func.func @transform_6(%arg0: i32) -> (i32, i32) {
    %c0_i32 = arith.constant 0 : i32
    %c0_i32_0 = arith.constant 0 : i32
    %c0_i32_1 = arith.constant 0 : i32
    return %c0_i32, %c0_i32_0 : i32, i32
  }
  func.func @transform_7(%arg0: i32) -> (i32, i32) {
    %c0_i32 = arith.constant 0 : i32
    %c0_i32_0 = arith.constant 0 : i32
    %c0_i32_1 = arith.constant 0 : i32
    return %c0_i32, %c0_i32_0 : i32, i32
  }
  func.func @transform_8(%arg0: i32) -> (i32, i32, i32) {
    %c0_i32 = arith.constant 0 : i32
    %c0_i32_0 = arith.constant 0 : i32
    %c0_i32_1 = arith.constant 0 : i32
    return %arg0, %c0_i32, %c0_i32_0 : i32, i32, i32
  }
}

</mosaic_0001>

<bundles_post_ra>
// kernel: tpu_custom_call.1
= control target key start
LH: loop header
LB: loop body
LE: loop exit
PB: predicated region body
PF: predicated region fallthrough
CT: control target
= control target key end

     0   :  { %s2545_s0 = inlined_call_operand.hbm [shape: f32[2,8,32], index: 0, kind: input, shape index: {}]   ;;  %s2546_s1 = inlined_call_operand.hbm [shape: f32[2,8,32], index: 1, kind: input, shape index: {}]   ;;  %s2547_s2 = inlined_call_operand.hbm [shape: f32[32,32], index: 2, kind: input, shape index: {}]   ;;  %s2548_s3 = inlined_call_operand.vmem [shape: f32[1,32], index: 3, kind: input, shape index: {}]   ;;  %s2549_s4 = inlined_call_operand.hbm [shape: f32[32,64], index: 4, kind: input, shape index: {}]   ;;  %s2550_s5 = inlined_call_operand.vmem [shape: f32[1,64], index: 5, kind: input, shape index: {}]   ;;  %s2551_s6 = inlined_call_operand.hbm [shape: f32[32,128], index: 6, kind: input, shape index: {}]   ;;  %s2552_s7 = inlined_call_operand.vmem [shape: f32[1,128], index: 7, kind: input, shape index: {}]   ;;  %s2553_s8 = inlined_call_operand.hbm [shape: f32[2,8,128], index: 8, kind: output, shape index: {}]  }
   0x1   :  { %2559 = sst [smem:[#allocation19_spill]] %s2547_s2 }
   0x2   :  { %2560 = sst [smem:[#allocation20_spill]] %s2549_s4 }
   0x3   :  { %2561 = sst [smem:[#allocation21_spill]] %s2551_s6 }
   0x4   :  { %13 = vsyncpa [#allocation3], 0 }
   0x5   :  { %15 = vsyncpa [#allocation3 + $0x1], 0 }
   0x6   :  { %16 = vsyncpa [#allocation6], 0 }
   0x7   :  { %18 = vsyncpa [#allocation6 + $0x1], 0 }
   0x8   :  { %19 = vsyncpa [#allocation9], 0 }
   0x9   :  { %20 = vsyncpa [#allocation4], 0 }
   0xa   :  { %22 = vsyncpa [#allocation4 + $0x1], 0  ;;  %s2217_s27 = smov 0   ;;  %s2219_s28 = smov 0  }
   0xb   :  { %s2221_s29 = smov 0   ;;  %s2223_s30 = smov 0  }
   0xc LB: > { %2562 = sst [smem:[#allocation17_spill]] %s2149_s29  ;;  %s2238_s9 = sadd.s32 4294967295, %s2153_s30   ;;  %s2153_s30 = sphi %s2223_s30, %s2587_s30   ;;  %s2149_s29 = sphi %s2221_s29, %s2584_s29   ;;  %s2145_s28 = sphi %s2219_s28, %s2586_s28   ;;  %s2141_s27 = sphi %s2217_s27, %s2585_s27  }
   0xd   : > { %s1676_s10 = sadd.s32 4294967294, %s2153_s30   ;;  %p48_p0 = scmp.ne.s32.totalorder %s2145_s28, %s2141_s27 }
   0xe   : > { %p2554_p1 = scmp.eq.s32.totalorder %s2238_s9, 0  ;;  %p230_p3 = scmp.eq.s32.totalorder %s1676_s10, 1 }
   0xf   : > { %p1677_p5 = scmp.ge.s32.totalorder %s2153_s30, 1  ;;  %p237_p7 = scmp.lt.s32.totalorder %s2153_s30, 3 }
  0x10   : > { %p2247_p4 = por %p2554_p1, %p48_p0  ;;  %p2252_p6 = por %p230_p3, %p48_p0 }
  0x11   : > { %p2257_p8 = pnand %p1677_p5, %p237_p7  ;;  %s2155_s14 = smov [#allocation7]  }
  0x12   : > { %s2563_s11 = scalar_select %p2247_p4, 1, 0 }
  0x13   : > { %s2564_s12 = scalar_select %p2252_p6, 1, 0 }
  0x14   : > { %s2565_s13 = scalar_select %p2257_p8, 1, 0 }
  0x15   : > { %s249_s15 = sshll.u32 %s2155_s14, 4  ;;  %p1852_p9 = pneg %p2257_p8  ;;  %s250_s15 = int_to_ptr.vmem [resolvable:$true] %s249_s15 }
  0x16   : > { %s2156_s17 = smov [#allocation8]   ;;  %s2157_s19 = smov [#allocation10]  }
  0x17   : > { %p2266_p11 = pnand %p1852_p9, %p2554_p1  ;;  %s265_s18 = sshll.u32 %s2156_s17, 4  ;;  %s266_s18 = int_to_ptr.vmem [resolvable:$true] %s265_s18 }
  0x18   : > { %s281_s20 = sshll.u32 %s2157_s19, 4  ;;  %s1954_s21 = scalar_lea.vmem %s250_s15, 512  ;;  %s282_s20 = int_to_ptr.vmem [resolvable:$true] %s281_s20 }
  0x19   : > { %p1945_p12 = pneg %p2266_p11  ;;  %p1955_p13 = scmp.ne.s32.totalorder %s250_s15, %s1954_s21 }
  0x1a   : > { %p1962_p5 = scmp.lt.s32.totalorder %s250_s15, %s250_s15  ;;  %p1963_p7 = scmp.lt.s32.totalorder %s1954_s21, %s1954_s21 }
  0x1b   : > { %p1957_p0 = pnand %p1955_p13, %p1945_p12 }
  0x1c   : > { %p1964_p9 = por %p1963_p7, %p1962_p5 }
  0x1d   : > { %p1958_p3 = pneg %p1957_p0 }
  0x1f   : > { %p1965_p10 = pnand %p1964_p9, %p1958_p3 }
  0x21   : > { %1968 = shalt.err (!%p1965_p10)
}
  0x22   : > { %s2158_s22 = smov 128   ;;  %s2159_s23 = smov 8  }
  0x23   : > { %s2567_s2 = sld [smem:[#allocation19_spill]]  ;;  %s1980_s26 = scalar_lea.vmem %s266_s18, 512 }
  0x24   : > { %p1981_p1 = scmp.ne.s32.totalorder %s266_s18, %s1980_s26  ;;  %p1988_p2 = scmp.lt.s32.totalorder %s266_s18, %s266_s18 }
  0x25   : > { %p1989_p6 = scmp.lt.s32.totalorder %s1980_s26, %s1980_s26 }
  0x26   : > { %p1983_p13 = pnand %p1981_p1, %p1945_p12 }
  0x27   : > { %p1990_p5 = por %p1989_p6, %p1988_p2 }
  0x28   : > { %p1984_p0 = pneg %p1983_p13 }
  0x29   : > { %1855 = dma.hbm_to_vmem [thread:$0]  (!%p2266_p11), %s2567_s2, 512, %s250_s15, [#allocation6], %s2158_s22, %s2158_s22, %s2159_s23  }
  0x2a   : > { %p1991_p3 = pnand %p1990_p5, %p1984_p0 }
  0x2c   : > { %1994 = shalt.err (!%p1991_p3)
}
  0x2d   : > { %s2568_s4 = sld [smem:[#allocation20_spill]]  ;;  %s2006_s15 = scalar_lea.vmem %s282_s20, 512 }
  0x2e   : > { %p2007_p10 = scmp.ne.s32.totalorder %s282_s20, %s2006_s15  ;;  %p2014_p9 = scmp.lt.s32.totalorder %s282_s20, %s282_s20 }
  0x2f   : > { %p2015_p13 = scmp.lt.s32.totalorder %s2006_s15, %s2006_s15 }
  0x30   : > { %p2009_p7 = pnand %p2007_p10, %p1945_p12 }
  0x31   : > { %p2016_p4 = por %p2015_p13, %p2014_p9 }
  0x32   : > { %p2010_p1 = pneg %p2009_p7 }
  0x33   : > { %1858 = dma.hbm_to_vmem [thread:$0]  (!%p2266_p11), %s2568_s4, 512, %s266_s18, [#allocation9], %s2158_s22, %s2158_s22, %s2159_s23  }
  0x34   : > { %p2017_p2 = pnand %p2016_p4, %p2010_p1 }
  0x36   : > { %2020 = shalt.err (!%p2017_p2)
}
  0x37   : > { %s2569_s6 = sld [smem:[#allocation21_spill]]  ;;  %s2297_s18 = sadd.s32 1, %s2153_s30  }
  0x38   : > { %s32_s21 = ssub.s32 %s2153_s30, %s2297_s18  ;;  %s35_s16 = sadd.s32 1, %s2149_s29 }
  0x39   : > { %p33_p4 = scmp.eq.s32.totalorder %s32_s21, 0  ;;  %p42_p6 = scmp.ne.s32.totalorder %s2149_s29, %s2145_s28 }
  0x3a   : > { %p43_p12 = scmp.eq.s32.totalorder %s2153_s30, 0  ;;  %p1876_p0 = scmp.lt.s32.totalorder %s2153_s30, 2 }
  0x3b   : > { %s2307_s24 = scalar_select %p33_p4, %s2149_s29, %s35_s16  }
  0x3c   : > { %p44_p5 = por %p43_p12, %p42_p6  ;;  %p2571_p3 = scmp.eq.s32.totalorder %s2238_s9, 1 }
  0x3d   : > { %1861 = dma.hbm_to_vmem [thread:$0]  (!%p2266_p11), %s2569_s6, 512, %s282_s20, [#allocation9], %s2158_s22, %s2158_s22, %s2159_s23  }
  0x3e   : > { %2570 = sst [smem:[#allocation18_spill]] %s2307_s24  ;;  %p2311_p10 = por %p2571_p3, %p42_p6 }
  0x3f   : > { %s298_s26 = sand.u32 1, %s2149_s29   ;;  %s1683_s10 = sshll.u32 %s2153_s30, 7 }
  0x40   : > { %s2572_s25 = scalar_select %p2311_p10, 1, 0 }
  0x41   : > { %s2317_s20 = sshll.u32 %s298_s26, 3  ;;  %s2322_s14 = scalar_lea.hbm %s2545_s0, %s1683_s10 }
  0x42   : > { %s302_s15 = scalar_lea.vmem [#allocation2], %s2317_s20  ;;  %p2325_p11 = pnand %p1876_p0, %p44_p5 }
  0x43   : > { %s309_s17 = sshll.u32 %s302_s15, 4  ;;  %s2332_s2 = scalar_lea.hbm %s2546_s1, %s1683_s10  ;;  %s310_s17 = int_to_ptr.vmem [resolvable:$true] %s309_s17 }
  0x44   : > { %s299_s22 = scalar_lea.sflag [#allocation3], %s298_s26  ;;  %s2021_s23 = scalar_lea.hbm %s2322_s14, 128 }
  0x45   : > { %p2022_p7 = scmp.ne.s32.totalorder %s2322_s14, %s2021_s23  ;;  %p2023_p1 = pneg %p2325_p11 }
  0x46   : > { %s2026_s6 = scalar_lea.hbm %s2545_s0, 256  ;;  %p2027_p2 = scmp.lt.s32.totalorder %s2322_s14, %s2545_s0 }
  0x47   : > { %p2024_p9 = pnand %p2023_p1, %p2022_p7  ;;  %p2028_p4 = scmp.lt.s32.totalorder %s2026_s6, %s2021_s23 }
  0x49   : > { %p2025_p13 = pneg %p2024_p9  ;;  %p2029_p6 = por %p2028_p4, %p2027_p2 }
  0x4b   : > { %p2030_p12 = pnand %p2029_p6, %p2025_p13 }
  0x4d   : > { %2033 = shalt.err (!%p2030_p12)
}
  0x4e   : > { %s2034_s26 = scalar_lea.vmem %s310_s17, 128  ;;  %s2160_s10 = smov [#allocation2]  }
  0x4f   : > { %p2035_p0 = scmp.ne.s32.totalorder %s310_s17, %s2034_s26  ;;  %s2039_s21 = sshll.u32 %s2160_s10, 4  ;;  %s2040_s21 = int_to_ptr.vmem [resolvable:$false] %s2039_s21 }
  0x50   : > { %s2041_s4 = scalar_lea.vmem %s2040_s21, 256  ;;  %p2042_p7 = scmp.lt.s32.totalorder %s310_s17, %s2040_s21 }
  0x51   : > { %p2037_p5 = pnand %p2035_p0, %p2023_p1  ;;  %p2043_p9 = scmp.lt.s32.totalorder %s2041_s4, %s2034_s26 }
  0x53   : > { %p2038_p3 = pneg %p2037_p5  ;;  %p2044_p10 = por %p2043_p9, %p2042_p7 }
  0x55   : > { %p2045_p8 = pnand %p2044_p10, %p2038_p3 }
  0x57   : > { %2048 = shalt.err (!%p2045_p8)
}
  0x58   : > { %1865 = dma.hbm_to_vmem [thread:$0]  (!%p2325_p11), %s2322_s14, 128, %s310_s17, %s299_s22  }
  0x59   : > { %s316_s6 = sand.u32 1, %s2153_s30   ;;  %s320_s29 = scalar_lea.vmem [#allocation5], %s2317_s20 }
  0x5a   : > { %s327_s24 = sshll.u32 %s320_s29, 4  ;;  %s317_s16 = scalar_lea.sflag [#allocation6], %s316_s6  ;;  %s328_s24 = int_to_ptr.vmem [resolvable:$true] %s327_s24 }
  0x5b   : > { %s2049_s23 = scalar_lea.hbm %s2332_s2, 128  ;;  %s2054_s10 = scalar_lea.hbm %s2546_s1, 256 }
  0x5c   : > { %p2050_p13 = scmp.ne.s32.totalorder %s2332_s2, %s2049_s23  ;;  %p2055_p2 = scmp.lt.s32.totalorder %s2332_s2, %s2546_s1 }
  0x5d   : > { %p2056_p4 = scmp.lt.s32.totalorder %s2054_s10, %s2049_s23 }
  0x5e   : > { %p2052_p8 = pnand %p2050_p13, %p2023_p1 }
  0x5f   : > { %p2057_p6 = por %p2056_p4, %p2055_p2 }
  0x60   : > { %p2053_p10 = pneg %p2052_p8 }
  0x62   : > { %p2058_p12 = pnand %p2057_p6, %p2053_p10 }
  0x64   : > { %2061 = shalt.err (!%p2058_p12)
}
  0x65   : > { %s2062_s20 = scalar_lea.vmem %s328_s24, 128  ;;  %s2161_s14 = smov [#allocation5]  }
  0x66   : > { %p2063_p0 = scmp.ne.s32.totalorder %s328_s24, %s2062_s20  ;;  %s2067_s17 = sshll.u32 %s2161_s14, 4  ;;  %s2068_s17 = int_to_ptr.vmem [resolvable:$false] %s2067_s17 }
  0x67   : > { %s2069_s22 = scalar_lea.vmem %s2068_s17, 256  ;;  %p2070_p7 = scmp.lt.s32.totalorder %s328_s24, %s2068_s17 }
  0x68   : > { %p2065_p5 = pnand %p2063_p0, %p2023_p1  ;;  %p2071_p9 = scmp.lt.s32.totalorder %s2069_s22, %s2062_s20 }
  0x6a   : > { %p2066_p3 = pneg %p2065_p5  ;;  %p2072_p13 = por %p2071_p9, %p2070_p7 }
  0x6c   : > { %p2073_p8 = pnand %p2072_p13, %p2066_p3 }
  0x6e   : > { %2076 = shalt.err (!%p2073_p8)
}
  0x6f   : > { %1868 = dma.hbm_to_vmem [thread:$0]  (!%p2325_p11), %s2332_s2, 128, %s328_s24, %s317_s16  }
  0x70   : > { %p2574_p10 = scmp.ne.s32.totalorder %s2565_s13, 0 }
  0x71   : > { %s2377_s6 = sand.u32 (!%p2574_p10), 1, %s2145_s28   ;;  %p2575_p1 = scmp.ne.s32.totalorder (!%p2574_p10), %s2563_s11, 0 }
  0x72   : > { %336 = sbr.rel (%p2574_p10) target bundleno = 2153 (0x869), region = 52  ;;  %s2380_s29 = sshll.u32 (!%p2574_p10), %s2377_s6, 3 }
  0x73   : > { %s339_s23 = scalar_lea.sflag (!%p2574_p10), [#allocation3], %s2377_s6  ;;  %s342_s15 = scalar_lea.vmem (!%p2574_p10), [#allocation2], %s2380_s29 }
  0x77   : > { %2120 = dma.done.wait (%p2575_p1), %s339_s23, 128  }
  0x78   : > { %2122 = vsyncadd (%p2575_p1), %s339_s23, 4294967168  ;;  %s347_s2 = sand.u32 1, %s2238_s9   ;;  %s351_s19 = scalar_lea.vmem [#allocation5], %s2380_s29 }
  0x79   : > { %s348_s13 = scalar_lea.sflag [#allocation6], %s347_s2 }
  0x7a   : > { %2124 = dma.done.wait (%p2575_p1), %s348_s13, 128  }
  0x7b   : > { %2126 = vsyncadd (%p2575_p1), %s348_s13, 4294967168  ;;  %p2576_p11 = scmp.eq.s32.totalorder %s2238_s9, 0 }
  0x7d   : > { %2128 = dma.done.wait (%p2576_p11), [#allocation6], 512   ;;  %p2577_p2 = pmov %p2576_p11 }
  0x7f   : > { %2130 = vsyncadd (%p2577_p2), [#allocation6], 4294966784  ;;  %p2578_p4 = pmov %p2577_p2 }
  0x80   : > { %p2579_p6 = pmov %p2577_p2 }
  0x81   : > { %2132 = dma.done.wait (%p2578_p4), [#allocation9], 1024  }
  0x82   : > { %2134 = vsyncadd (%p2579_p6), [#allocation9], 4294966272  ;;  %v2162_v0 = vmov 0.0   ;;  %vm2163_vm0 = vmmov 0   ;;  %v406_v1 = vld [vmem:[#allocation7 + $0x18] sm:$0xff]  ;;  %v405_v3 = vld [vmem:[#allocation7 + $0x10] sm:$0xff] }
  0x83   : > { %1752 = vmatprep.subr.mxu0 %v2162_v0  ;;  %1763 = vmatprep.subr.mxu1 %v2162_v0  ;;  %v492_v2 = vld [vmem:[#allocation8 + $0x18] sm:$0xff]  ;;  %v491_v4 = vld [vmem:[#allocation8 + $0x10] sm:$0xff]  ;;  %v404_v5 = vld [vmem:[#allocation7 + $0x8] sm:$0xff]  ;;  %vm414_vm1 = vcmask 261120   ;;  %vm581_vm2 = vcmask 64512   ;;  %s2164_s10 = smov 120  }
  0x84   : > { %1760 = vmatprep.mubr.msk.f32.mxu0 %vm2163_vm0, %v2162_v0  ;;  %1771 = vmatprep.mubr.msk.f32.mxu1 %vm2163_vm0, %v2162_v0  ;;  %v490_v6 = vld [vmem:[#allocation8 + $0x8] sm:$0xff]  ;;  %v403_v7 = vld [vmem:[#allocation7] sm:$0xff]  ;;  %v402_v10 = vld [vmem:[%s351_s19] sm:$0xff]  ;;  %s2165_s21 = smov 88   ;;  %s2166_s4 = smov 96  }
  0x85   : > { %1753 = vmatpush3.msra.mxu0 %v406_v1  ;;  %1764 = vmatpush3.msra.mxu1 %v492_v2  ;;  %v489_v8 = vld [vmem:[#allocation8] sm:$0xff]  ;;  %s2167_s20 = smov 112   ;;  %s2168_s14 = smov 80   ;;  %v985_v50 = vld [vmem:[#allocation10 + $0x8] sm:$0xff] }
  0x86   : > { %1754 = vmatprep.subr.mxu0 %v2162_v0  ;;  %1765 = vmatprep.subr.mxu1 %v2162_v0  ;;  %v401_v9 = vld [vmem:[%s342_s15] sm:$0xff]  ;;  %s2169_s17 = smov 104   ;;  %s2170_s22 = smov 72  }
  0x87   : > { %1755 = vmatpush3.msra.mxu0 %v405_v3  ;;  %1766 = vmatpush3.msra.mxu1 %v491_v4  ;;  %v1693_v11 = vld [vmem:[%s2548_s3] ss:$0 sm:$0xff]  ;;  %s1715_s2 = sshll.u32 %s2238_s9, 7  ;;  %s400_s13 = scalar_lea.vmem [#allocation11], %s2380_s29 }
  0x88   : > { %1756 = vmatprep.subr.mxu0 %v2162_v0  ;;  %1767 = vmatprep.subr.mxu1 %v2162_v0  ;;  %v1695_v12 = vld [vmem:[%s2550_s5] ss:$0 sm:$0xff]  ;;  %s1555_s19 = sshll.u32 %s400_s13, 4  ;;  %s2508_s16 = scalar_lea.hbm %s2553_s8, %s1715_s2  ;;  %s1556_s19 = int_to_ptr.vmem [resolvable:$true] %s1555_s19 }
  0x89   : > { %1757 = vmatpush3.msra.mxu0 %v404_v5  ;;  %1768 = vmatpush3.msra.mxu1 %v490_v6  ;;  %v745_v31 = vld [vmem:[#allocation10] sm:$0xff]  ;;  %s1542_s26 = scalar_lea.sflag [#allocation4], %s2377_s6  ;;  %p2580_p0 = scmp.ne.s32.totalorder %s2572_s25, 0 }
  0x8a   : > { %1758 = vmatprep.subr.mxu0 %v2162_v0  ;;  %1769 = vmatprep.subr.mxu1 %v2162_v0  ;;  %v1697_v4 = vld [vmem:[%s2552_s7] ss:$0 sm:$0xff] }
  0x8b   : > { %1759 = vmatpush3.msra.mxu0 %v403_v7  ;;  %1770 = vmatpush3.msra.mxu1 %v489_v8 }
  0x8c   : > { %1761 = vmatmul.mubr.msk.f32.vlgmr.msra.gmra.mxu0 %vm414_vm1, %v401_v9  ;;  %1772 = vmatmul.mubr.msk.f32.vlgmr.msra.gmra.mxu1 %vm414_vm1, %v402_v10  ;;  %v1225_v9 = vld [vmem:[#allocation10 + $0x10] sm:$0xff] }
  0x8d   : > { %1774 = vmatprep.subr.mxu0 %v2162_v0  ;;  %1776 = vmatprep.mubr.msk.f32.mxu0 %vm2163_vm0, %v2162_v0 }
  0x8e   : > { %1779 = vmatprep.subr.mxu1 %v2162_v0  ;;  %1781 = vmatprep.mubr.msk.f32.mxu1 %vm2163_vm0, %v2162_v0 }
 0x14c   : > { %v484_v13 = vpop.f32.mrf.mxu0  ;;  %v569_v14 = vpop.f32.mrf.mxu1 }
 0x14d   : > { %v485_v15 = vadd.f32 %v1693_v11, %v484_v13  ;;  %v2430_v16 = vadd.f32 %v1695_v12, %v569_v14 }
 0x14e   : > { %v1762_v17 = vpop.f32.mrf.mxu0  ;;  %v1773_v18 = vpop.f32.mrf.mxu1 }
 0x14f   : > { %v2432_v19 = vmul.f32 0.35355338, %v485_v15  ;;  %822 = vrot.lane.b32.xlu1 %v2430_v16, %s2164_s10  ;;  %1775 = vmatpush3.xpose.msk.msra.mxu0 %vm581_vm2, %v2430_v16 }
 0x150   : > { %1784 = vmatprep.subr.mxu0 %v2162_v0 }
 0x152   : > { %1777 = vmatmul.mubr.msk.f32.vlgmr.msra.gmra.mxu0 %vm581_vm2, %v2432_v19 }
 0x153   : > { %820 = vrot.lane.b32.xlu1 %v2432_v19, %s2164_s10  ;;  %1786 = vmatprep.mubr.msk.f32.mxu0 %vm2163_vm0, %v2162_v0  ;;  %s2077_s10 = scalar_lea.vmem %s1556_s19, 128 }
 0x154   : > { %1785 = vmatpush3.msra.mxu0 %v745_v31  ;;  %p2078_p12 = scmp.ne.s32.totalorder %s1556_s19, %s2077_s10 }
 0x155   : > { %1794 = vmatprep.subr.mxu0 %v2162_v0 }
 0x156   : > { %p2079_p5 = pnand %p2078_p12, %p2580_p0 }
 0x157   : > { %907 = vrot.lane.b32.xlu1 %v2430_v16, %s2165_s21  ;;  %s2171_s21 = smov [#allocation11]  }
 0x158   : > { %p2080_p3 = pneg %p2079_p5  ;;  %s2081_s9 = sshll.u32 %s2171_s21, 4  ;;  %s2082_s9 = int_to_ptr.vmem [resolvable:$false] %s2081_s9 }
 0x159   : > { %s2083_s29 = scalar_lea.vmem %s2082_s9, 256  ;;  %p2084_p7 = scmp.lt.s32.totalorder %s1556_s19, %s2082_s9 }
 0x15a   : > { %p2085_p9 = scmp.lt.s32.totalorder %s2083_s29, %s2077_s10 }
 0x15c   : > { %p2086_p13 = por %p2085_p9, %p2084_p7 }
 0x15e   : > { %p2087_p8 = pnand %p2086_p13, %p2080_p3 }
 0x1c1   : > { %v823_v27 = vpop.permute.xlu1 %822 }
 0x1c5   : > { %v821_v30 = vpop.permute.xlu1 %820 }
 0x1c9   : > { %v908_v32 = vpop.permute.xlu1 %907 }
 0x212   : > { %v654_v20 = vpop.f32.mrf.mxu0 }
 0x213   : > { %v658_v21 = vsel %vm581_vm2, %v654_v20, -inf }
 0x214   : > { %659 = vmax.xlane.f32.xlu0 %v658_v21  ;;  %v1778_v22 = vpop.f32.mrf.mxu0 }
 0x22a   : > { %667 = vrot.lane.b32.xlu0 %v2430_v16, %s2166_s4 }
 0x29d   : > { %v660_v23 = vpop.xlane.xlu0 %659 }
 0x29e   : > { %v661_v24 = vsub.f32 %v654_v20, %v660_v23 }
 0x2a0   : > { %v662_v25 = vmul.f32 1.442695, %v661_v24 }
 0x2a1   : > { %v668_v26 = vpop.permute.xlu0 %667 }
 0x2a2   : > { %1927 = vpow2.f32 %v662_v25  ;;  %1780 = vmatpush3.msra.mxu1 %v668_v26 }
 0x2a3   : > { %1789 = vmatprep.subr.mxu1 %v2162_v0 }
 0x2af   : > { %v1928_v28 = vpop.eup %1927 }
 0x2b0   : > { %1782 = vmatmul.mubr.msk.f32.vlgmr.msra.gmra.mxu1 %vm581_vm2, %v1928_v28  ;;  %v664_v29 = vsel %vm581_vm2, %v1928_v28, 0.0 }
 0x2b1   : > { %1790 = vmatpush3.xpose.msk.msra.mxu1 %vm581_vm2, %v823_v27  ;;  %665 = vadd.xlane.f32.xlu1 %v664_v29 }
 0x2b2   : > { %1791 = vmatprep.mubr.msk.f32.mxu1 %vm2163_vm0, %v2162_v0  ;;  %1799 = vmatprep.subr.mxu1 %v2162_v0 }
 0x2b4   : > { %1792 = vmatmul.mubr.msk.f32.vlgmr.msra.gmra.mxu1 %vm581_vm2, %v821_v30 }
 0x2b5   : > { %1801 = vmatprep.mubr.msk.f32.mxu1 %vm2163_vm0, %v2162_v0  ;;  %1800 = vmatpush3.msra.mxu1 %v985_v50 }
 0x2b6   : > { %1809 = vmatprep.subr.mxu1 %v2162_v0 }
 0x2c2   : > { %1060 = vrot.lane.b32.xlu1 %v2432_v19, %s2167_s20 }
 0x2c6   : > { %1147 = vrot.lane.b32.xlu1 %v2430_v16, %s2168_s14 }
 0x33a   : > { %v666_v33 = vpop.xlane.xlu1 %665 }
 0x33b   : > { %1929 = vrcp.f32 %v666_v33 }
 0x33e   : > { %v1061_v47 = vpop.permute.xlu1 %1060 }
 0x342   : > { %v1148_v51 = vpop.permute.xlu1 %1147 }
 0x348   : > { %v1930_v34 = vpop.eup %1929 }
 0x370   : > { %v739_v35 = vpop.f32.mrf.mxu1 }
 0x371   : > { %v744_v36 = vmul.f32 %v1930_v34, %v739_v35 }
 0x372   : > { %v1783_v37 = vpop.f32.mrf.mxu1 }
 0x373   : > { %1787 = vmatmul.mubr.msk.f32.vlgmr.msra.gmra.mxu0 %vm581_vm2, %v744_v36 }
 0x374   : > { %1795 = vmatpush3.msra.mxu0 %v908_v32  ;;  %v894_v38 = vpop.f32.mrf.mxu1  ;;  %1796 = vmatprep.mubr.msk.f32.mxu0 %vm2163_vm0, %v2162_v0 }
 0x375   : > { %v898_v39 = vsel %vm581_vm2, %v894_v38, -inf  ;;  %1804 = vmatprep.subr.mxu0 %v2162_v0 }
 0x376   : > { %899 = vmax.xlane.f32.xlu0 %v898_v39  ;;  %v1793_v40 = vpop.f32.mrf.mxu1 }
 0x38c   : > { %1062 = vrot.lane.b32.xlu0 %v2430_v16, %s2167_s20 }
 0x3ff   : > { %v900_v41 = vpop.xlane.xlu0 %899 }
 0x400   : > { %v901_v42 = vsub.f32 %v894_v38, %v900_v41 }
 0x402   : > { %v902_v43 = vmul.f32 1.442695, %v901_v42 }
 0x403   : > { %v1063_v45 = vpop.permute.xlu0 %1062 }
 0x404   : > { %1931 = vpow2.f32 %v902_v43 }
 0x411   : > { %v1932_v44 = vpop.eup %1931 }
 0x412   : > { %1797 = vmatmul.mubr.msk.f32.vlgmr.msra.gmra.mxu0 %vm581_vm2, %v1932_v44  ;;  %v904_v46 = vsel %vm581_vm2, %v1932_v44, 0.0 }
 0x413   : > { %1805 = vmatpush3.xpose.msk.msra.mxu0 %vm581_vm2, %v1063_v45  ;;  %905 = vadd.xlane.f32.xlu1 %v904_v46 }
 0x414   : > { %1806 = vmatprep.mubr.msk.f32.mxu0 %vm2163_vm0, %v2162_v0  ;;  %1814 = vmatprep.subr.mxu0 %v2162_v0 }
 0x416   : > { %1807 = vmatmul.mubr.msk.f32.vlgmr.msra.gmra.mxu0 %vm581_vm2, %v1061_v47 }
 0x417   : > { %1816 = vmatprep.mubr.msk.f32.mxu0 %vm2163_vm0, %v2162_v0  ;;  %1815 = vmatpush3.msra.mxu0 %v1225_v9 }
 0x418   : > { %1824 = vmatprep.subr.mxu0 %v2162_v0 }
 0x424   : > { %1300 = vrot.lane.b32.xlu1 %v2432_v19, %s2169_s17 }
 0x433   : > { %v815_v48 = vpop.f32.mrf.mxu0 }
 0x434   : > { %v819_v5 = vadd.f32 %v1697_v4, %v815_v48 }
 0x435   : > { %v1788_v49 = vpop.f32.mrf.mxu0 }
 0x49c   : > { %v906_v52 = vpop.xlane.xlu1 %905 }
 0x49d   : > { %1933 = vrcp.f32 %v906_v52 }
 0x4a0   : > { %v1301_v3 = vpop.permute.xlu1 %1300 }
 0x4aa   : > { %v1934_v53 = vpop.eup %1933 }
 0x4d2   : > { %v979_v54 = vpop.f32.mrf.mxu0 }
 0x4d3   : > { %v984_v55 = vmul.f32 %v1934_v53, %v979_v54 }
 0x4d4   : > { %v1798_v56 = vpop.f32.mrf.mxu0 }
 0x4d5   : > { %1802 = vmatmul.mubr.msk.f32.vlgmr.msra.gmra.mxu1 %vm581_vm2, %v984_v55 }
 0x4d6   : > { %1810 = vmatpush3.msra.mxu1 %v1148_v51  ;;  %v1134_v57 = vpop.f32.mrf.mxu0  ;;  %1811 = vmatprep.mubr.msk.f32.mxu1 %vm2163_vm0, %v2162_v0 }
 0x4d7   : > { %v1138_v58 = vsel %vm581_vm2, %v1134_v57, -inf  ;;  %1819 = vmatprep.subr.mxu1 %v2162_v0 }
 0x4d8   : > { %1139 = vmax.xlane.f32.xlu0 %v1138_v58  ;;  %v1808_v59 = vpop.f32.mrf.mxu0 }
 0x4ee   : > { %1302 = vrot.lane.b32.xlu0 %v2430_v16, %s2169_s17 }
 0x561   : > { %v1140_v60 = vpop.xlane.xlu0 %1139 }
 0x562   : > { %v1141_v61 = vsub.f32 %v1134_v57, %v1140_v60 }
 0x564   : > { %v1142_v62 = vmul.f32 1.442695, %v1141_v61 }
 0x565   : > { %v1303_v1 = vpop.permute.xlu0 %1302 }
 0x566   : > { %1935 = vpow2.f32 %v1142_v62 }
 0x573   : > { %v1936_v63 = vpop.eup %1935 }
 0x574   : > { %1812 = vmatmul.mubr.msk.f32.vlgmr.msra.gmra.mxu1 %vm581_vm2, %v1936_v63  ;;  %v1144_v2 = vsel %vm581_vm2, %v1936_v63, 0.0 }
 0x575   : > { %1820 = vmatpush3.xpose.msk.msra.mxu1 %vm581_vm2, %v1303_v1  ;;  %1145 = vadd.xlane.f32.xlu1 %v1144_v2 }
 0x576   : > { %1821 = vmatprep.mubr.msk.f32.mxu1 %vm2163_vm0, %v2162_v0  ;;  %1829 = vmatprep.subr.mxu1 %v2162_v0 }
 0x578   : > { %1822 = vmatmul.mubr.msk.f32.vlgmr.msra.gmra.mxu1 %vm581_vm2, %v1301_v3 }
 0x579   : > { %1831 = vmatprep.mubr.msk.f32.mxu1 %vm2163_vm0, %v2162_v0 }
 0x586   : > { %1387 = vrot.lane.b32.xlu1 %v2430_v16, %s2170_s22 }
 0x595   : > { %v1055_v6 = vpop.f32.mrf.mxu1 }
 0x596   : > { %v1059_v7 = vadd.f32 %v1055_v6, %v819_v5 }
 0x597   : > { %v1803_v8 = vpop.f32.mrf.mxu1 }
 0x5fe   : > { %v1146_v10 = vpop.xlane.xlu1 %1145 }
 0x5ff   : > { %1937 = vrcp.f32 %v1146_v10 }
 0x602   : > { %v1388_v15 = vpop.permute.xlu1 %1387 }
 0x60c   : > { %v1938_v11 = vpop.eup %1937 }
 0x634   : > { %v1219_v12 = vpop.f32.mrf.mxu1 }
 0x635   : > { %v1224_v13 = vmul.f32 %v1938_v11, %v1219_v12 }
 0x636   : > { %v1813_v14 = vpop.f32.mrf.mxu1 }
 0x637   : > { %1817 = vmatmul.mubr.msk.f32.vlgmr.msra.gmra.mxu0 %vm581_vm2, %v1224_v13 }
 0x638   : > { %1825 = vmatpush3.msra.mxu0 %v1388_v15  ;;  %v1374_v16 = vpop.f32.mrf.mxu1  ;;  %1826 = vmatprep.mubr.msk.f32.mxu0 %vm2163_vm0, %v2162_v0  ;;  %v1465_v0 = vld [vmem:[#allocation10 + $0x18] sm:$0xff] }
 0x639   : > { %v1378_v17 = vsel %vm581_vm2, %v1374_v16, -inf  ;;  %1830 = vmatpush3.msra.mxu1 %v1465_v0 }
 0x63a   : > { %1379 = vmax.xlane.f32.xlu0 %v1378_v17  ;;  %v1823_v18 = vpop.f32.mrf.mxu1 }
 0x6c3   : > { %v1380_v19 = vpop.xlane.xlu0 %1379 }
 0x6c4   : > { %v1381_v20 = vsub.f32 %v1374_v16, %v1380_v19 }
 0x6c6   : > { %v1382_v21 = vmul.f32 1.442695, %v1381_v20 }
 0x6c8   : > { %1939 = vpow2.f32 %v1382_v21 }
 0x6d5   : > { %v1940_v22 = vpop.eup %1939 }
 0x6d6   : > { %1827 = vmatmul.mubr.msk.f32.vlgmr.msra.gmra.mxu0 %vm581_vm2, %v1940_v22  ;;  %v1384_v23 = vsel %vm581_vm2, %v1940_v22, 0.0 }
 0x6d7   : > { %1385 = vadd.xlane.f32.xlu0 %v1384_v23 }
 0x6f7   : > { %v1295_v24 = vpop.f32.mrf.mxu0 }
 0x6f8   : > { %v1299_v25 = vadd.f32 %v1295_v24, %v1059_v7 }
 0x6f9   : > { %v1818_v26 = vpop.f32.mrf.mxu0 }
 0x760   : > { %v1386_v27 = vpop.xlane.xlu0 %1385 }
 0x761   : > { %1941 = vrcp.f32 %v1386_v27 }
 0x76e   : > { %v1942_v28 = vpop.eup %1941 }
 0x796   : > { %v1459_v29 = vpop.f32.mrf.mxu0 }
 0x797   : > { %v1464_v30 = vmul.f32 %v1942_v28, %v1459_v29 }
 0x798   : > { %v1828_v31 = vpop.f32.mrf.mxu0 }
 0x799   : > { %1832 = vmatmul.mubr.msk.f32.vlgmr.msra.gmra.mxu1 %vm581_vm2, %v1464_v30 }
 0x859   : > { %v1535_v32 = vpop.f32.mrf.mxu1 }
 0x85a   : > { %v1539_v33 = vadd.f32 %v1535_v32, %v1299_v25 }
 0x85b   : > { %v1833_v34 = vpop.f32.mrf.mxu1 }
 0x85c   : > { %1540 = vst [vmem:[%s400_s13] sm:$0xff] %v1539_v33 }
 0x85d   : > { %2090 = shalt.err (!%p2087_p8)
}
 0x85e   : > { %s2091_s4 = scalar_lea.hbm %s2508_s16, 128  ;;  %s2095_s14 = scalar_lea.hbm %s2553_s8, 256 }
 0x85f   : > { %p2092_p10 = scmp.ne.s32.totalorder %s2508_s16, %s2091_s4  ;;  %p2096_p2 = scmp.lt.s32.totalorder %s2508_s16, %s2553_s8 }
 0x860   : > { %p2097_p4 = scmp.lt.s32.totalorder %s2095_s14, %s2091_s4 }
 0x861   : > { %p2093_p1 = pnand %p2092_p10, %p2580_p0 }
 0x862   : > { %p2098_p6 = por %p2097_p4, %p2096_p2 }
 0x863   : > { %p2094_p11 = pneg %p2093_p1 }
 0x865   : > { %p2099_p12 = pnand %p2098_p6, %p2094_p11 }
 0x867   : > { %2102 = shalt.err (!%p2099_p12)
}
 0x868   : > { %1850 = dma.vmem_to_hbm [thread:$0]  (%p2580_p0), %s1556_s19, 128, %s2508_s16, %s1542_s26  }
 0x869 PF: > { %s1567_s23 = sand.u32 1, %s2141_s27   ;;  %p2581_p5 = scmp.ne.s32.totalorder %s2564_s12, 0 }
 0x86a   : > { %p2582_p3 = scmp.ge.s32.totalorder %s2153_s30, 2  ;;  %s1568_s15 = scalar_lea.sflag [#allocation4], %s1567_s23 }
 0x86c   : > { %p1870_p7 = pnand %p2582_p3, %p2581_p5 }
 0x86e   : > { %p1871_p9 = pneg %p1870_p7 }
 0x870   : > { %2136 = dma.done.wait (%p1871_p9), %s1568_s15, 128  }
 0x871   : > { %2138 = vsyncadd (%p1871_p9), %s1568_s15, 4294967168  ;;  %s2583_s2 = sld [smem:[#allocation17_spill]]  ;;  %p25_p13 = scmp.ge.s32.totalorder %s2297_s18, 4  }
 0x872   : > { %s2584_s29 = sld [smem:[#allocation18_spill]]  ;;  %s2585_s27 = smov %s2145_s28 }
 0x873   : > { %s2587_s30 = smov %s2297_s18  ;;  %27 = sbr.rel (!%p25_p13) target bundleno = 12 (0xc), region = 122 }
 0x877   : > { %s2586_s28 = smov %s2583_s2 }
 0x878   :  { %1573 = vsyncpa [#allocation3], 1 }
 0x879   :  { %1575 = vsyncpa [#allocation3 + $0x1], 1 }
 0x87a   :  { %1576 = vsyncpa [#allocation6], 1 }
 0x87b   :  { %1578 = vsyncpa [#allocation6 + $0x1], 1 }
 0x87c   :  { %1579 = vsyncpa [#allocation9], 1 }
 0x87d   :  { %1580 = vsyncpa [#allocation4], 1 }
 0x87e   :  { %1582 = vsyncpa [#allocation4 + $0x1], 1 }

</bundles_post_ra>
